<compile_context>
chip_gen: v7x
topology: tpu7x:2x2x1
jax: 0.10.0
libtpu: 0.0.40
codegen_flags: <defaults>
</compile_context>

<pallas_src>
import functools

import jax
import jax.numpy as jnp
from jax import lax
from jax.experimental import pallas as pl
from jax.experimental.pallas import tpu as pltpu


def _layer_norm(x, gamma, beta, eps=1e-5):
    # PyTorch LayerNorm: biased variance over the last dim, eps=1e-5.
    mu = jnp.mean(x, axis=-1, keepdims=True)
    xc = x - mu
    var = jnp.mean(xc * xc, axis=-1, keepdims=True)
    inv = lax.rsqrt(var + eps)
    return xc * inv * gamma + beta


def decoder_layer_kernel(
    x_ref,       # (Bb*T, E)  f32 : Bb sequences packed along rows
    wqkv_ref,    # (E, 3E)    bf16 (Q columns pre-scaled by 1/sqrt(hd))
    bqkv_ref,    # (1, 3E)    f32  (Q part pre-scaled)
    wout_ref,    # (E, E)     bf16
    bout_ref,    # (1, E)     f32
    g1_ref,      # (1, E)     norm1 weight
    be1_ref,     # (1, E)     norm1 bias
    wff1_ref,    # (E, 2E)    bf16
    bff1_ref,    # (1, 2E)
    wff2_ref,    # (2E, E)    bf16
    bff2_ref,    # (1, E)
    g2_ref,      # (1, E)     norm2 weight
    be2_ref,     # (1, E)     norm2 bias
    o_ref,       # (Bb*T, E)
    *,
    num_heads,
    head_dim,
    seq_len,
    batch_block,
):
    T = seq_len
    Bb = batch_block
    E = num_heads * head_dim
    M = Bb * T

    x = x_ref[...].astype(jnp.float32)                       # (M, E)

    # ---- QKV projection: one (M,E)@(E,3E) bf16 matmul, f32 accumulate ------
    # Scale is already folded into the Q columns of the weight/bias.
    qkv_f32 = jnp.dot(x.astype(jnp.bfloat16), wqkv_ref[...],
                      preferred_element_type=jnp.float32) + bqkv_ref[...]
    qkv = qkv_f32.astype(jnp.bfloat16)                        # single cast

    # ---- Causal additive mask, (1,T,T); broadcasts for free in the add -----
    row = lax.broadcasted_iota(jnp.int32, (T, T), 0)
    col = lax.broadcasted_iota(jnp.int32, (T, T), 1)
    mask = jnp.where(col <= row, 0.0, -1e30).astype(jnp.float32)[None, :, :]

    # ---- Attention + out_proj, accumulated per head (no concat scratch) ----
    wout = wout_ref[...]                                       # (E, E) bf16
    attn = None
    for h in range(num_heads):
        q = qkv[:, h * head_dim:(h + 1) * head_dim]
        q = q.reshape(Bb, T, head_dim)
        k = qkv[:, E + h * head_dim:E + (h + 1) * head_dim]
        k = k.reshape(Bb, T, head_dim)
        v = qkv[:, 2 * E + h * head_dim:2 * E + (h + 1) * head_dim]
        v = v.reshape(Bb, T, head_dim)

        s = jnp.einsum("btd,bsd->bts", q, k,
                       preferred_element_type=jnp.float32) + mask
        m = jnp.max(s, axis=-1, keepdims=True)
        p = jnp.exp(s - m)                                     # unnormalized
        denom = jnp.sum(p, axis=-1, keepdims=True)
        o = jnp.einsum("bts,bsd->btd", p.astype(jnp.bfloat16), v,
                       preferred_element_type=jnp.float32)
        # normalize after PV: EUP reciprocal + T*hd multiplies instead of
        # dividing the full (T,T) score matrix.
        o = o * pl.reciprocal(denom, approx=True)
        o = o.reshape(M, head_dim).astype(jnp.bfloat16)
        # per-head out_proj accumulation: full-E-wide result, no 8-lane stores
        contrib = jnp.dot(o, wout[h * head_dim:(h + 1) * head_dim, :],
                          preferred_element_type=jnp.float32)
        attn = contrib if attn is None else attn + contrib
    attn = attn + bout_ref[...]

    # ---- Residual + LayerNorm 1 --------------------------------------------
    x1 = _layer_norm(x + attn, g1_ref[...], be1_ref[...])

    # ---- Feed-forward (Linear -> ReLU -> Linear) + residual + LN 2 ----------
    ff = jnp.dot(x1.astype(jnp.bfloat16), wff1_ref[...],
                 preferred_element_type=jnp.float32) + bff1_ref[...]
    ff = jnp.maximum(ff, 0.0)
    ff = jnp.dot(ff.astype(jnp.bfloat16), wff2_ref[...],
                 preferred_element_type=jnp.float32) + bff2_ref[...]
    x2 = _layer_norm(x1 + ff, g2_ref[...], be2_ref[...])

    o_ref[...] = x2.astype(o_ref.dtype)


def _vmem_bytes_estimate(rows, E):
    """Rough per-grid-step VMEM working set (bytes)."""
    slabs = 2 * 2 * rows * E * 4                       # x/out slabs, 2 buffers
    inter = rows * (3 * E) * 6                         # qkv f32 + bf16
    inter += rows * (2 * E) * 6                        # ff hidden f32 + bf16
    inter += 6 * rows * E * 4                          # attn/x1/x2/residual temps
    inter += 3 * rows * 8 * 4                          # per-head s/p temps (T<=rows)
    wbytes = 2 * 2 * (3 * E * E + E * E + 2 * E * E + 2 * E * E)  # bf16 x2 buf
    return slabs + inter + wbytes


def _pick_batch_block(B, T, E, *, target_rows=1024, vmem_budget=24 << 20):
    """Divisor Bb of B giving the largest slab within budget.

    Enforces the (8,128) sublane rule on the (Bb*T, E) row block and prefers
    >= 2 grid steps so v7x's two TensorCores both get work.
    """
    def valid(d):
        return B % d == 0 and ((d * T) % 8 == 0 or d == B)

    divisors = [d for d in range(1, B + 1) if valid(d)]
    assert divisors, "no valid batch block (check T vs sublane rule)"
    preferred = [d for d in divisors if B // d >= 2] or divisors
    best = preferred[0]
    for d in preferred:
        rows = d * T
        if rows <= target_rows and _vmem_bytes_estimate(rows, E) <= vmem_budget:
            best = max(best, d)
    return best


def decoder_layer_forward(x, params, *, num_heads):
    B, T, E = x.shape
    assert E % num_heads == 0, "embed_dim must be divisible by num_heads"
    head_dim = E // num_heads
    assert num_heads * head_dim == E

    bb = _pick_batch_block(B, T, E)
    assert (bb * T) % 8 == 0 or bb * T == B * T
    x_flat = x.reshape(B * T, E)

    # bf16 weights for the MXU; fold 1/sqrt(hd) into the Q part of qkv.
    scale = 1.0 / (float(head_dim) ** 0.5)
    wqkv_scaled = params["wqkv"].at[:, :E].multiply(scale)
    bqkv_scaled = params["bqkv"].at[:, :E].multiply(scale)
    w = {
        "wqkv": wqkv_scaled.astype(jnp.bfloat16),
        "wout": params["wout"].astype(jnp.bfloat16),
        "wff1": params["wff1"].astype(jnp.bfloat16),
        "wff2": params["wff2"].astype(jnp.bfloat16),
    }

    def full(arr):
        shape = arr.shape
        n = len(shape)
        return pl.BlockSpec(shape, lambda b: (0,) * n)   # grid-invariant block

    kernel = functools.partial(
        decoder_layer_kernel, num_heads=num_heads, head_dim=head_dim,
        seq_len=T, batch_block=bb)

    est = _vmem_bytes_estimate(bb * T, E)
    vmem_limit = int(min(max(2 * est + (4 << 20), 16 << 20), 32 << 20))

    out_flat = pl.pallas_call(
        kernel,
        out_shape=jax.ShapeDtypeStruct((B * T, E), x.dtype),
        grid_spec=pltpu.PrefetchScalarGridSpec(
            num_scalar_prefetch=0,
            grid=(B // bb,),
            in_specs=[
                pl.BlockSpec((bb * T, E), lambda b: (b, 0)),   # x slab
                full(w["wqkv"]), full(bqkv_scaled),
                full(w["wout"]), full(params["bout"]),
                full(params["g1"]), full(params["be1"]),
                full(w["wff1"]), full(params["bff1"]),
                full(w["wff2"]), full(params["bff2"]),
                full(params["g2"]), full(params["be2"]),
            ],
            out_specs=pl.BlockSpec((bb * T, E), lambda b: (b, 0)),
        ),
        compiler_params=pltpu.CompilerParams(
            dimension_semantics=("parallel",),
            vmem_limit_bytes=vmem_limit,
        ),
    )(
        x_flat,
        w["wqkv"], bqkv_scaled,
        w["wout"], params["bout"],
        params["g1"], params["be1"],
        w["wff1"], params["bff1"],
        w["wff2"], params["bff2"],
        params["g2"], params["be2"],
    )
    return out_flat.reshape(B, T, E)


def init_params(key, embed_dim):
    E = embed_dim
    ks = jax.random.split(key, 8)
    scale = 0.02
    return {
        # Linear weights stored as (in, out) so kernel does x @ W + b.
        "wqkv": scale * jax.random.normal(ks[0], (E, 3 * E), jnp.float32),
        "bqkv": scale * jax.random.normal(ks[1], (1, 3 * E), jnp.float32),
        "wout": scale * jax.random.normal(ks[2], (E, E), jnp.float32),
        "bout": scale * jax.random.normal(ks[3], (1, E), jnp.float32),
        "g1": jnp.ones((1, E), jnp.float32),
        "be1": jnp.zeros((1, E), jnp.float32),
        "wff1": scale * jax.random.normal(ks[4], (E, 2 * E), jnp.float32),
        "bff1": scale * jax.random.normal(ks[5], (1, 2 * E), jnp.float32),
        "wff2": scale * jax.random.normal(ks[6], (2 * E, E), jnp.float32),
        "bff2": scale * jax.random.normal(ks[7], (1, E), jnp.float32),
        "g2": jnp.ones((1, E), jnp.float32),
        "be2": jnp.zeros((1, E), jnp.float32),
    }


def reference_forward(x, params, *, num_heads):
    """Pure-JAX f32 reference mirroring the PyTorch forward."""
    B, T, E = x.shape
    hd = E // num_heads
    qkv = x @ params["wqkv"] + params["bqkv"][0]
    qkv = qkv.reshape(B, T, 3, num_heads, hd).transpose(2, 0, 3, 1, 4)
    Q, K, V = qkv[0], qkv[1], qkv[2]                      # (B, H, T, hd)
    scores = jnp.einsum("bhqd,bhkd->bhqk", Q, K) / (hd ** 0.5)
    row = jnp.arange(T)[:, None]
    col = jnp.arange(T)[None, :]
    scores = jnp.where(col <= row, scores, -jnp.inf)
    A = jax.nn.softmax(scores, axis=-1)
    H = jnp.einsum("bhqk,bhkd->bhqd", A, V).transpose(0, 2, 1, 3).reshape(B, T, E)
    H = H @ params["wout"] + params["bout"][0]

    def ln(v, g, b):
        mu = jnp.mean(v, -1, keepdims=True)
        var = jnp.mean((v - mu) ** 2, -1, keepdims=True)
        return (v - mu) / jnp.sqrt(var + 1e-5) * g + b

    x1 = ln(x + H, params["g1"][0], params["be1"][0])
    ff = jnp.maximum(x1 @ params["wff1"] + params["bff1"][0], 0.0)
    ff = ff @ params["wff2"] + params["bff2"][0]
    return ln(x1 + ff, params["g2"][0], params["be2"][0])


if __name__ == "__main__":
    B, T, E, NH = 2, 8, 32, 4

    key = jax.random.PRNGKey(0)
    kx, kp = jax.random.split(key)
    x = jax.random.normal(kx, (B, T, E), jnp.float32)
    params = init_params(kp, E)

    out = decoder_layer_forward(x, params, num_heads=NH)
    out = jax.block_until_ready(out)

    ref = reference_forward(x, params, num_heads=NH)
    assert out.shape == (B, T, E)
    # Kernel uses bf16 matmul operands (f32 accumulation) + approx reciprocal
    # (use approx=False if tighter parity with the f32/PyTorch reference is
    # ever required), so compare with a bf16-appropriate tolerance.
    max_err = float(jnp.max(jnp.abs(out - ref)))
    assert jnp.allclose(out, ref, atol=2e-2, rtol=2e-2), max_err

    print("KERNEL_OK")
</pallas_src>

<mosaic_0001>
module attributes {stable_mosaic.version = 11 : i64} {
  func.func @decoder_layer_kernel(%arg0: i32, %arg1: memref<8x32xf32, #tpu.memory_space<vmem>>, %arg2: memref<32x96xbf16, #tpu.memory_space<vmem>>, %arg3: memref<1x96xf32, #tpu.memory_space<vmem>>, %arg4: memref<32x32xbf16, #tpu.memory_space<vmem>>, %arg5: memref<1x32xf32, #tpu.memory_space<vmem>>, %arg6: memref<1x32xf32, #tpu.memory_space<vmem>>, %arg7: memref<1x32xf32, #tpu.memory_space<vmem>>, %arg8: memref<32x64xbf16, #tpu.memory_space<vmem>>, %arg9: memref<1x64xf32, #tpu.memory_space<vmem>>, %arg10: memref<64x32xbf16, #tpu.memory_space<vmem>>, %arg11: memref<1x32xf32, #tpu.memory_space<vmem>>, %arg12: memref<1x32xf32, #tpu.memory_space<vmem>>, %arg13: memref<1x32xf32, #tpu.memory_space<vmem>>, %arg14: memref<8x32xf32, #tpu.memory_space<vmem>>) attributes {dimension_semantics = [#tpu.dimension_semantics<parallel>], iteration_bounds = array<i64: 2>, scalar_prefetch = 0 : i64, scratch_operands = 0 : i64, tpu.core_type = #tpu.core_type<tc>, window_params = [{transform_indices = @transform_0, window_bounds = array<i64: 8, 32>}, {pipeline_mode = #tpu.pipeline_mode<synchronous>, transform_indices = @transform_1, window_bounds = array<i64: 32, 96>}, {pipeline_mode = #tpu.pipeline_mode<synchronous>, transform_indices = @transform_2, window_bounds = array<i64: 1, 96>}, {pipeline_mode = #tpu.pipeline_mode<synchronous>, transform_indices = @transform_3, window_bounds = array<i64: 32, 32>}, {pipeline_mode = #tpu.pipeline_mode<synchronous>, transform_indices = @transform_4, window_bounds = array<i64: 1, 32>}, {pipeline_mode = #tpu.pipeline_mode<synchronous>, transform_indices = @transform_5, window_bounds = array<i64: 1, 32>}, {pipeline_mode = #tpu.pipeline_mode<synchronous>, transform_indices = @transform_6, window_bounds = array<i64: 1, 32>}, {pipeline_mode = #tpu.pipeline_mode<synchronous>, transform_indices = @transform_7, window_bounds = array<i64: 32, 64>}, {pipeline_mode = #tpu.pipeline_mode<synchronous>, transform_indices = @transform_8, window_bounds = array<i64: 1, 64>}, {pipeline_mode = #tpu.pipeline_mode<synchronous>, transform_indices = @transform_9, window_bounds = array<i64: 64, 32>}, {pipeline_mode = #tpu.pipeline_mode<synchronous>, transform_indices = @transform_10, window_bounds = array<i64: 1, 32>}, {pipeline_mode = #tpu.pipeline_mode<synchronous>, transform_indices = @transform_11, window_bounds = array<i64: 1, 32>}, {pipeline_mode = #tpu.pipeline_mode<synchronous>, transform_indices = @transform_12, window_bounds = array<i64: 1, 32>}, {transform_indices = @transform_13, window_bounds = array<i64: 8, 32>}]} {
    %c0 = arith.constant 0 : index
    %c0_0 = arith.constant 0 : index
    %0 = vector.load %arg1[%c0, %c0_0] : memref<8x32xf32, #tpu.memory_space<vmem>>, vector<8x32xf32>
    %1 = arith.truncf %0 : vector<8x32xf32> to vector<8x32xbf16>
    %c0_1 = arith.constant 0 : index
    %c0_2 = arith.constant 0 : index
    %2 = vector.load %arg2[%c0_1, %c0_2] : memref<32x96xbf16, #tpu.memory_space<vmem>>, vector<32x96xbf16>
    %cst = arith.constant dense<0.000000e+00> : vector<8x96xf32>
    %3 = tpu.matmul %1, %2, %cst {dimension_numbers = #tpu.dot_dimension_numbers<[1], [0], [0], [1], [0, 0, 1, 1], [], []>} : vector<8x32xbf16>, vector<32x96xbf16>, vector<8x96xf32> -> vector<8x96xf32>
    %c0_3 = arith.constant 0 : index
    %c0_4 = arith.constant 0 : index
    %4 = vector.load %arg3[%c0_3, %c0_4] : memref<1x96xf32, #tpu.memory_space<vmem>>, vector<1x96xf32>
    %5 = vector.broadcast %4 : vector<1x96xf32> to vector<8x96xf32>
    %6 = arith.addf %3, %5 : vector<8x96xf32>
    %7 = arith.truncf %6 : vector<8x96xf32> to vector<8x96xbf16>
    %8 = tpu.iota {dimensions = array<i32: 0>} : vector<8x8xi32>
    %9 = tpu.iota {dimensions = array<i32: 1>} : vector<8x8xi32>
    %10 = arith.cmpi sle, %9, %8 : vector<8x8xi32>
    %cst_5 = arith.constant 0.000000e+00 : f32
    %cst_6 = arith.constant -1.000000e+30 : f32
    %11 = vector.broadcast %cst_5 : f32 to vector<8x8xf32>
    %12 = vector.broadcast %cst_6 : f32 to vector<8x8xf32>
    %13 = arith.select %10, %11, %12 : vector<8x8xi1>, vector<8x8xf32>
    %14 = vector.shape_cast %13 : vector<8x8xf32> to vector<1x8x8xf32>
    %c0_7 = arith.constant 0 : index
    %c0_8 = arith.constant 0 : index
    %15 = vector.load %arg4[%c0_7, %c0_8] : memref<32x32xbf16, #tpu.memory_space<vmem>>, vector<32x32xbf16>
    %16 = vector.extract_strided_slice %7 {offsets = [0, 0], sizes = [8, 8], strides = [1, 1]} : vector<8x96xbf16> to vector<8x8xbf16>
    %17 = vector.shape_cast %16 : vector<8x8xbf16> to vector<1x8x8xbf16>
    %18 = vector.extract_strided_slice %7 {offsets = [0, 32], sizes = [8, 8], strides = [1, 1]} : vector<8x96xbf16> to vector<8x8xbf16>
    %19 = vector.shape_cast %18 : vector<8x8xbf16> to vector<1x8x8xbf16>
    %20 = vector.extract_strided_slice %7 {offsets = [0, 64], sizes = [8, 8], strides = [1, 1]} : vector<8x96xbf16> to vector<8x8xbf16>
    %21 = vector.shape_cast %20 : vector<8x8xbf16> to vector<1x8x8xbf16>
    "tpu.trace_start"() <{level = 10 : i32, message = "btd,bsd->bts"}> : () -> ()
    %cst_9 = arith.constant dense<0.000000e+00> : vector<1x8x8xf32>
    %22 = tpu.matmul %17, %19, %cst_9 {dimension_numbers = #tpu.dot_dimension_numbers<[2], [2], [1], [1], [0, 0, 0, 1, 1, 1], [0], [0]>} : vector<1x8x8xbf16>, vector<1x8x8xbf16>, vector<1x8x8xf32> -> vector<1x8x8xf32>
    "tpu.trace_stop"() : () -> ()
    %23 = arith.addf %22, %14 : vector<1x8x8xf32>
    %cst_10 = arith.constant dense<0xFF800000> : vector<1x8xf32>
    %24 = vector.multi_reduction <maximumf>, %23, %cst_10 [2] : vector<1x8x8xf32> to vector<1x8xf32>
    %25 = vector.shape_cast %24 : vector<1x8xf32> to vector<1x8x1xf32>
    %26 = vector.broadcast %25 : vector<1x8x1xf32> to vector<1x8x8xf32>
    %27 = arith.subf %23, %26 : vector<1x8x8xf32>
    %28 = math.exp %27 : vector<1x8x8xf32>
    %cst_11 = arith.constant dense<0.000000e+00> : vector<1x8xf32>
    %29 = vector.multi_reduction <add>, %28, %cst_11 [2] : vector<1x8x8xf32> to vector<1x8xf32>
    %30 = vector.shape_cast %29 : vector<1x8xf32> to vector<1x8x1xf32>
    %31 = arith.truncf %28 : vector<1x8x8xf32> to vector<1x8x8xbf16>
    "tpu.trace_start"() <{level = 10 : i32, message = "bts,bsd->btd"}> : () -> ()
    %cst_12 = arith.constant dense<0.000000e+00> : vector<1x8x8xf32>
    %32 = tpu.matmul %31, %21, %cst_12 {dimension_numbers = #tpu.dot_dimension_numbers<[2], [1], [1], [2], [0, 0, 0, 1, 1, 2], [0], [0]>} : vector<1x8x8xbf16>, vector<1x8x8xbf16>, vector<1x8x8xf32> -> vector<1x8x8xf32>
    "tpu.trace_stop"() : () -> ()
    %33 = tpu.reciprocal %30 {approx = true} : vector<1x8x1xf32> -> vector<1x8x1xf32>
    %34 = vector.broadcast %33 : vector<1x8x1xf32> to vector<1x8x8xf32>
    %35 = arith.mulf %32, %34 : vector<1x8x8xf32>
    %36 = vector.shape_cast %35 : vector<1x8x8xf32> to vector<8x8xf32>
    %37 = arith.truncf %36 : vector<8x8xf32> to vector<8x8xbf16>
    %38 = vector.extract_strided_slice %15 {offsets = [0, 0], sizes = [8, 32], strides = [1, 1]} : vector<32x32xbf16> to vector<8x32xbf16>
    %cst_13 = arith.constant dense<0.000000e+00> : vector<8x32xf32>
    %39 = tpu.matmul %37, %38, %cst_13 {dimension_numbers = #tpu.dot_dimension_numbers<[1], [0], [0], [1], [0, 0, 1, 1], [], []>} : vector<8x8xbf16>, vector<8x32xbf16>, vector<8x32xf32> -> vector<8x32xf32>
    %40 = vector.extract_strided_slice %7 {offsets = [0, 8], sizes = [8, 8], strides = [1, 1]} : vector<8x96xbf16> to vector<8x8xbf16>
    %41 = vector.shape_cast %40 : vector<8x8xbf16> to vector<1x8x8xbf16>
    %42 = vector.extract_strided_slice %7 {offsets = [0, 40], sizes = [8, 8], strides = [1, 1]} : vector<8x96xbf16> to vector<8x8xbf16>
    %43 = vector.shape_cast %42 : vector<8x8xbf16> to vector<1x8x8xbf16>
    %44 = vector.extract_strided_slice %7 {offsets = [0, 72], sizes = [8, 8], strides = [1, 1]} : vector<8x96xbf16> to vector<8x8xbf16>
    %45 = vector.shape_cast %44 : vector<8x8xbf16> to vector<1x8x8xbf16>
    "tpu.trace_start"() <{level = 10 : i32, message = "btd,bsd->bts"}> : () -> ()
    %cst_14 = arith.constant dense<0.000000e+00> : vector<1x8x8xf32>
    %46 = tpu.matmul %41, %43, %cst_14 {dimension_numbers = #tpu.dot_dimension_numbers<[2], [2], [1], [1], [0, 0, 0, 1, 1, 1], [0], [0]>} : vector<1x8x8xbf16>, vector<1x8x8xbf16>, vector<1x8x8xf32> -> vector<1x8x8xf32>
    "tpu.trace_stop"() : () -> ()
    %47 = arith.addf %46, %14 : vector<1x8x8xf32>
    %cst_15 = arith.constant dense<0xFF800000> : vector<1x8xf32>
    %48 = vector.multi_reduction <maximumf>, %47, %cst_15 [2] : vector<1x8x8xf32> to vector<1x8xf32>
    %49 = vector.shape_cast %48 : vector<1x8xf32> to vector<1x8x1xf32>
    %50 = vector.broadcast %49 : vector<1x8x1xf32> to vector<1x8x8xf32>
    %51 = arith.subf %47, %50 : vector<1x8x8xf32>
    %52 = math.exp %51 : vector<1x8x8xf32>
    %cst_16 = arith.constant dense<0.000000e+00> : vector<1x8xf32>
    %53 = vector.multi_reduction <add>, %52, %cst_16 [2] : vector<1x8x8xf32> to vector<1x8xf32>
    %54 = vector.shape_cast %53 : vector<1x8xf32> to vector<1x8x1xf32>
    %55 = arith.truncf %52 : vector<1x8x8xf32> to vector<1x8x8xbf16>
    "tpu.trace_start"() <{level = 10 : i32, message = "bts,bsd->btd"}> : () -> ()
    %cst_17 = arith.constant dense<0.000000e+00> : vector<1x8x8xf32>
    %56 = tpu.matmul %55, %45, %cst_17 {dimension_numbers = #tpu.dot_dimension_numbers<[2], [1], [1], [2], [0, 0, 0, 1, 1, 2], [0], [0]>} : vector<1x8x8xbf16>, vector<1x8x8xbf16>, vector<1x8x8xf32> -> vector<1x8x8xf32>
    "tpu.trace_stop"() : () -> ()
    %57 = tpu.reciprocal %54 {approx = true} : vector<1x8x1xf32> -> vector<1x8x1xf32>
    %58 = vector.broadcast %57 : vector<1x8x1xf32> to vector<1x8x8xf32>
    %59 = arith.mulf %56, %58 : vector<1x8x8xf32>
    %60 = vector.shape_cast %59 : vector<1x8x8xf32> to vector<8x8xf32>
    %61 = arith.truncf %60 : vector<8x8xf32> to vector<8x8xbf16>
    %62 = vector.extract_strided_slice %15 {offsets = [8, 0], sizes = [8, 32], strides = [1, 1]} : vector<32x32xbf16> to vector<8x32xbf16>
    %cst_18 = arith.constant dense<0.000000e+00> : vector<8x32xf32>
    %63 = tpu.matmul %61, %62, %cst_18 {dimension_numbers = #tpu.dot_dimension_numbers<[1], [0], [0], [1], [0, 0, 1, 1], [], []>} : vector<8x8xbf16>, vector<8x32xbf16>, vector<8x32xf32> -> vector<8x32xf32>
    %64 = arith.addf %39, %63 : vector<8x32xf32>
    %65 = vector.extract_strided_slice %7 {offsets = [0, 16], sizes = [8, 8], strides = [1, 1]} : vector<8x96xbf16> to vector<8x8xbf16>
    %66 = vector.shape_cast %65 : vector<8x8xbf16> to vector<1x8x8xbf16>
    %67 = vector.extract_strided_slice %7 {offsets = [0, 48], sizes = [8, 8], strides = [1, 1]} : vector<8x96xbf16> to vector<8x8xbf16>
    %68 = vector.shape_cast %67 : vector<8x8xbf16> to vector<1x8x8xbf16>
    %69 = vector.extract_strided_slice %7 {offsets = [0, 80], sizes = [8, 8], strides = [1, 1]} : vector<8x96xbf16> to vector<8x8xbf16>
    %70 = vector.shape_cast %69 : vector<8x8xbf16> to vector<1x8x8xbf16>
    "tpu.trace_start"() <{level = 10 : i32, message = "btd,bsd->bts"}> : () -> ()
    %cst_19 = arith.constant dense<0.000000e+00> : vector<1x8x8xf32>
    %71 = tpu.matmul %66, %68, %cst_19 {dimension_numbers = #tpu.dot_dimension_numbers<[2], [2], [1], [1], [0, 0, 0, 1, 1, 1], [0], [0]>} : vector<1x8x8xbf16>, vector<1x8x8xbf16>, vector<1x8x8xf32> -> vector<1x8x8xf32>
    "tpu.trace_stop"() : () -> ()
    %72 = arith.addf %71, %14 : vector<1x8x8xf32>
    %cst_20 = arith.constant dense<0xFF800000> : vector<1x8xf32>
    %73 = vector.multi_reduction <maximumf>, %72, %cst_20 [2] : vector<1x8x8xf32> to vector<1x8xf32>
    %74 = vector.shape_cast %73 : vector<1x8xf32> to vector<1x8x1xf32>
    %75 = vector.broadcast %74 : vector<1x8x1xf32> to vector<1x8x8xf32>
    %76 = arith.subf %72, %75 : vector<1x8x8xf32>
    %77 = math.exp %76 : vector<1x8x8xf32>
    %cst_21 = arith.constant dense<0.000000e+00> : vector<1x8xf32>
    %78 = vector.multi_reduction <add>, %77, %cst_21 [2] : vector<1x8x8xf32> to vector<1x8xf32>
    %79 = vector.shape_cast %78 : vector<1x8xf32> to vector<1x8x1xf32>
    %80 = arith.truncf %77 : vector<1x8x8xf32> to vector<1x8x8xbf16>
    "tpu.trace_start"() <{level = 10 : i32, message = "bts,bsd->btd"}> : () -> ()
    %cst_22 = arith.constant dense<0.000000e+00> : vector<1x8x8xf32>
    %81 = tpu.matmul %80, %70, %cst_22 {dimension_numbers = #tpu.dot_dimension_numbers<[2], [1], [1], [2], [0, 0, 0, 1, 1, 2], [0], [0]>} : vector<1x8x8xbf16>, vector<1x8x8xbf16>, vector<1x8x8xf32> -> vector<1x8x8xf32>
    "tpu.trace_stop"() : () -> ()
    %82 = tpu.reciprocal %79 {approx = true} : vector<1x8x1xf32> -> vector<1x8x1xf32>
    %83 = vector.broadcast %82 : vector<1x8x1xf32> to vector<1x8x8xf32>
    %84 = arith.mulf %81, %83 : vector<1x8x8xf32>
    %85 = vector.shape_cast %84 : vector<1x8x8xf32> to vector<8x8xf32>
    %86 = arith.truncf %85 : vector<8x8xf32> to vector<8x8xbf16>
    %87 = vector.extract_strided_slice %15 {offsets = [16, 0], sizes = [8, 32], strides = [1, 1]} : vector<32x32xbf16> to vector<8x32xbf16>
    %cst_23 = arith.constant dense<0.000000e+00> : vector<8x32xf32>
    %88 = tpu.matmul %86, %87, %cst_23 {dimension_numbers = #tpu.dot_dimension_numbers<[1], [0], [0], [1], [0, 0, 1, 1], [], []>} : vector<8x8xbf16>, vector<8x32xbf16>, vector<8x32xf32> -> vector<8x32xf32>
    %89 = arith.addf %64, %88 : vector<8x32xf32>
    %90 = vector.extract_strided_slice %7 {offsets = [0, 24], sizes = [8, 8], strides = [1, 1]} : vector<8x96xbf16> to vector<8x8xbf16>
    %91 = vector.shape_cast %90 : vector<8x8xbf16> to vector<1x8x8xbf16>
    %92 = vector.extract_strided_slice %7 {offsets = [0, 56], sizes = [8, 8], strides = [1, 1]} : vector<8x96xbf16> to vector<8x8xbf16>
    %93 = vector.shape_cast %92 : vector<8x8xbf16> to vector<1x8x8xbf16>
    %94 = vector.extract_strided_slice %7 {offsets = [0, 88], sizes = [8, 8], strides = [1, 1]} : vector<8x96xbf16> to vector<8x8xbf16>
    %95 = vector.shape_cast %94 : vector<8x8xbf16> to vector<1x8x8xbf16>
    "tpu.trace_start"() <{level = 10 : i32, message = "btd,bsd->bts"}> : () -> ()
    %cst_24 = arith.constant dense<0.000000e+00> : vector<1x8x8xf32>
    %96 = tpu.matmul %91, %93, %cst_24 {dimension_numbers = #tpu.dot_dimension_numbers<[2], [2], [1], [1], [0, 0, 0, 1, 1, 1], [0], [0]>} : vector<1x8x8xbf16>, vector<1x8x8xbf16>, vector<1x8x8xf32> -> vector<1x8x8xf32>
    "tpu.trace_stop"() : () -> ()
    %97 = arith.addf %96, %14 : vector<1x8x8xf32>
    %cst_25 = arith.constant dense<0xFF800000> : vector<1x8xf32>
    %98 = vector.multi_reduction <maximumf>, %97, %cst_25 [2] : vector<1x8x8xf32> to vector<1x8xf32>
    %99 = vector.shape_cast %98 : vector<1x8xf32> to vector<1x8x1xf32>
    %100 = vector.broadcast %99 : vector<1x8x1xf32> to vector<1x8x8xf32>
    %101 = arith.subf %97, %100 : vector<1x8x8xf32>
    %102 = math.exp %101 : vector<1x8x8xf32>
    %cst_26 = arith.constant dense<0.000000e+00> : vector<1x8xf32>
    %103 = vector.multi_reduction <add>, %102, %cst_26 [2] : vector<1x8x8xf32> to vector<1x8xf32>
    %104 = vector.shape_cast %103 : vector<1x8xf32> to vector<1x8x1xf32>
    %105 = arith.truncf %102 : vector<1x8x8xf32> to vector<1x8x8xbf16>
    "tpu.trace_start"() <{level = 10 : i32, message = "bts,bsd->btd"}> : () -> ()
    %cst_27 = arith.constant dense<0.000000e+00> : vector<1x8x8xf32>
    %106 = tpu.matmul %105, %95, %cst_27 {dimension_numbers = #tpu.dot_dimension_numbers<[2], [1], [1], [2], [0, 0, 0, 1, 1, 2], [0], [0]>} : vector<1x8x8xbf16>, vector<1x8x8xbf16>, vector<1x8x8xf32> -> vector<1x8x8xf32>
    "tpu.trace_stop"() : () -> ()
    %107 = tpu.reciprocal %104 {approx = true} : vector<1x8x1xf32> -> vector<1x8x1xf32>
    %108 = vector.broadcast %107 : vector<1x8x1xf32> to vector<1x8x8xf32>
    %109 = arith.mulf %106, %108 : vector<1x8x8xf32>
    %110 = vector.shape_cast %109 : vector<1x8x8xf32> to vector<8x8xf32>
    %111 = arith.truncf %110 : vector<8x8xf32> to vector<8x8xbf16>
    %112 = vector.extract_strided_slice %15 {offsets = [24, 0], sizes = [8, 32], strides = [1, 1]} : vector<32x32xbf16> to vector<8x32xbf16>
    %cst_28 = arith.constant dense<0.000000e+00> : vector<8x32xf32>
    %113 = tpu.matmul %111, %112, %cst_28 {dimension_numbers = #tpu.dot_dimension_numbers<[1], [0], [0], [1], [0, 0, 1, 1], [], []>} : vector<8x8xbf16>, vector<8x32xbf16>, vector<8x32xf32> -> vector<8x32xf32>
    %114 = arith.addf %89, %113 : vector<8x32xf32>
    %c0_29 = arith.constant 0 : index
    %c0_30 = arith.constant 0 : index
    %115 = vector.load %arg5[%c0_29, %c0_30] : memref<1x32xf32, #tpu.memory_space<vmem>>, vector<1x32xf32>
    %116 = vector.broadcast %115 : vector<1x32xf32> to vector<8x32xf32>
    %117 = arith.addf %114, %116 : vector<8x32xf32>
    %118 = arith.addf %0, %117 : vector<8x32xf32>
    %c0_31 = arith.constant 0 : index
    %c0_32 = arith.constant 0 : index
    %119 = vector.load %arg6[%c0_31, %c0_32] : memref<1x32xf32, #tpu.memory_space<vmem>>, vector<1x32xf32>
    %c0_33 = arith.constant 0 : index
    %c0_34 = arith.constant 0 : index
    %120 = vector.load %arg7[%c0_33, %c0_34] : memref<1x32xf32, #tpu.memory_space<vmem>>, vector<1x32xf32>
    %cst_35 = arith.constant dense<0.000000e+00> : vector<8xf32>
    %121 = vector.multi_reduction <add>, %118, %cst_35 [1] : vector<8x32xf32> to vector<8xf32>
    %122 = vector.shape_cast %121 : vector<8xf32> to vector<8x1xf32>
    %cst_36 = arith.constant 3.200000e+01 : f32
    %123 = vector.broadcast %cst_36 : f32 to vector<8x1xf32>
    %124 = arith.divf %122, %123 : vector<8x1xf32>
    %125 = vector.broadcast %124 : vector<8x1xf32> to vector<8x32xf32>
    %126 = arith.subf %118, %125 : vector<8x32xf32>
    %127 = arith.mulf %126, %126 : vector<8x32xf32>
    %cst_37 = arith.constant dense<0.000000e+00> : vector<8xf32>
    %128 = vector.multi_reduction <add>, %127, %cst_37 [1] : vector<8x32xf32> to vector<8xf32>
    %129 = vector.shape_cast %128 : vector<8xf32> to vector<8x1xf32>
    %cst_38 = arith.constant 3.200000e+01 : f32
    %130 = vector.broadcast %cst_38 : f32 to vector<8x1xf32>
    %131 = arith.divf %129, %130 : vector<8x1xf32>
    %cst_39 = arith.constant 9.99999974E-6 : f32
    %132 = vector.broadcast %cst_39 : f32 to vector<8x1xf32>
    %133 = arith.addf %131, %132 : vector<8x1xf32>
    %134 = math.rsqrt %133 : vector<8x1xf32>
    %135 = vector.broadcast %134 : vector<8x1xf32> to vector<8x32xf32>
    %136 = arith.mulf %126, %135 : vector<8x32xf32>
    %137 = vector.broadcast %119 : vector<1x32xf32> to vector<8x32xf32>
    %138 = arith.mulf %136, %137 : vector<8x32xf32>
    %139 = vector.broadcast %120 : vector<1x32xf32> to vector<8x32xf32>
    %140 = arith.addf %138, %139 : vector<8x32xf32>
    %141 = arith.truncf %140 : vector<8x32xf32> to vector<8x32xbf16>
    %c0_40 = arith.constant 0 : index
    %c0_41 = arith.constant 0 : index
    %142 = vector.load %arg8[%c0_40, %c0_41] : memref<32x64xbf16, #tpu.memory_space<vmem>>, vector<32x64xbf16>
    %cst_42 = arith.constant dense<0.000000e+00> : vector<8x64xf32>
    %143 = tpu.matmul %141, %142, %cst_42 {dimension_numbers = #tpu.dot_dimension_numbers<[1], [0], [0], [1], [0, 0, 1, 1], [], []>} : vector<8x32xbf16>, vector<32x64xbf16>, vector<8x64xf32> -> vector<8x64xf32>
    %c0_43 = arith.constant 0 : index
    %c0_44 = arith.constant 0 : index
    %144 = vector.load %arg9[%c0_43, %c0_44] : memref<1x64xf32, #tpu.memory_space<vmem>>, vector<1x64xf32>
    %145 = vector.broadcast %144 : vector<1x64xf32> to vector<8x64xf32>
    %146 = arith.addf %143, %145 : vector<8x64xf32>
    %cst_45 = arith.constant 0.000000e+00 : f32
    %147 = vector.broadcast %cst_45 : f32 to vector<8x64xf32>
    %148 = arith.maximumf %146, %147 : vector<8x64xf32>
    %149 = arith.truncf %148 : vector<8x64xf32> to vector<8x64xbf16>
    %c0_46 = arith.constant 0 : index
    %c0_47 = arith.constant 0 : index
    %150 = vector.load %arg10[%c0_46, %c0_47] : memref<64x32xbf16, #tpu.memory_space<vmem>>, vector<64x32xbf16>
    %cst_48 = arith.constant dense<0.000000e+00> : vector<8x32xf32>
    %151 = tpu.matmul %149, %150, %cst_48 {dimension_numbers = #tpu.dot_dimension_numbers<[1], [0], [0], [1], [0, 0, 1, 1], [], []>} : vector<8x64xbf16>, vector<64x32xbf16>, vector<8x32xf32> -> vector<8x32xf32>
    %c0_49 = arith.constant 0 : index
    %c0_50 = arith.constant 0 : index
    %152 = vector.load %arg11[%c0_49, %c0_50] : memref<1x32xf32, #tpu.memory_space<vmem>>, vector<1x32xf32>
    %153 = vector.broadcast %152 : vector<1x32xf32> to vector<8x32xf32>
    %154 = arith.addf %151, %153 : vector<8x32xf32>
    %155 = arith.addf %140, %154 : vector<8x32xf32>
    %c0_51 = arith.constant 0 : index
    %c0_52 = arith.constant 0 : index
    %156 = vector.load %arg12[%c0_51, %c0_52] : memref<1x32xf32, #tpu.memory_space<vmem>>, vector<1x32xf32>
    %c0_53 = arith.constant 0 : index
    %c0_54 = arith.constant 0 : index
    %157 = vector.load %arg13[%c0_53, %c0_54] : memref<1x32xf32, #tpu.memory_space<vmem>>, vector<1x32xf32>
    %cst_55 = arith.constant dense<0.000000e+00> : vector<8xf32>
    %158 = vector.multi_reduction <add>, %155, %cst_55 [1] : vector<8x32xf32> to vector<8xf32>
    %159 = vector.shape_cast %158 : vector<8xf32> to vector<8x1xf32>
    %cst_56 = arith.constant 3.200000e+01 : f32
    %160 = vector.broadcast %cst_56 : f32 to vector<8x1xf32>
    %161 = arith.divf %159, %160 : vector<8x1xf32>
    %162 = vector.broadcast %161 : vector<8x1xf32> to vector<8x32xf32>
    %163 = arith.subf %155, %162 : vector<8x32xf32>
    %164 = arith.mulf %163, %163 : vector<8x32xf32>
    %cst_57 = arith.constant dense<0.000000e+00> : vector<8xf32>
    %165 = vector.multi_reduction <add>, %164, %cst_57 [1] : vector<8x32xf32> to vector<8xf32>
    %166 = vector.shape_cast %165 : vector<8xf32> to vector<8x1xf32>
    %cst_58 = arith.constant 3.200000e+01 : f32
    %167 = vector.broadcast %cst_58 : f32 to vector<8x1xf32>
    %168 = arith.divf %166, %167 : vector<8x1xf32>
    %cst_59 = arith.constant 9.99999974E-6 : f32
    %169 = vector.broadcast %cst_59 : f32 to vector<8x1xf32>
    %170 = arith.addf %168, %169 : vector<8x1xf32>
    %171 = math.rsqrt %170 : vector<8x1xf32>
    %172 = vector.broadcast %171 : vector<8x1xf32> to vector<8x32xf32>
    %173 = arith.mulf %163, %172 : vector<8x32xf32>
    %174 = vector.broadcast %156 : vector<1x32xf32> to vector<8x32xf32>
    %175 = arith.mulf %173, %174 : vector<8x32xf32>
    %176 = vector.broadcast %157 : vector<1x32xf32> to vector<8x32xf32>
    %177 = arith.addf %175, %176 : vector<8x32xf32>
    %c0_60 = arith.constant 0 : index
    %c0_61 = arith.constant 0 : index
    %178 = vector.load %arg14[%c0_60, %c0_61] : memref<8x32xf32, #tpu.memory_space<vmem>>, vector<8x32xf32>
    tpu.vector_store %arg14[%c0_60, %c0_61], %177 {strides = array<i32>} : memref<8x32xf32, #tpu.memory_space<vmem>>, vector<8x32xf32>,
    return
  }
  func.func @transform_0(%arg0: i32) -> (i32, i32) {
    %c0_i32 = arith.constant 0 : i32
    %c0_i32_0 = arith.constant 0 : i32
    return %arg0, %c0_i32 : i32, i32
  }
  func.func @transform_1(%arg0: i32) -> (i32, i32) {
    %c0_i32 = arith.constant 0 : i32
    %c0_i32_0 = arith.constant 0 : i32
    %c0_i32_1 = arith.constant 0 : i32
    return %c0_i32, %c0_i32_0 : i32, i32
  }
  func.func @transform_2(%arg0: i32) -> (i32, i32) {
    %c0_i32 = arith.constant 0 : i32
    %c0_i32_0 = arith.constant 0 : i32
    %c0_i32_1 = arith.constant 0 : i32
    return %c0_i32, %c0_i32_0 : i32, i32
  }
  func.func @transform_3(%arg0: i32) -> (i32, i32) {
    %c0_i32 = arith.constant 0 : i32
    %c0_i32_0 = arith.constant 0 : i32
    %c0_i32_1 = arith.constant 0 : i32
    return %c0_i32, %c0_i32_0 : i32, i32
  }
  func.func @transform_4(%arg0: i32) -> (i32, i32) {
    %c0_i32 = arith.constant 0 : i32
    %c0_i32_0 = arith.constant 0 : i32
    %c0_i32_1 = arith.constant 0 : i32
    return %c0_i32, %c0_i32_0 : i32, i32
  }
  func.func @transform_5(%arg0: i32) -> (i32, i32) {
    %c0_i32 = arith.constant 0 : i32
    %c0_i32_0 = arith.constant 0 : i32
    %c0_i32_1 = arith.constant 0 : i32
    return %c0_i32, %c0_i32_0 : i32, i32
  }
  func.func @transform_6(%arg0: i32) -> (i32, i32) {
    %c0_i32 = arith.constant 0 : i32
    %c0_i32_0 = arith.constant 0 : i32
    %c0_i32_1 = arith.constant 0 : i32
    return %c0_i32, %c0_i32_0 : i32, i32
  }
  func.func @transform_7(%arg0: i32) -> (i32, i32) {
    %c0_i32 = arith.constant 0 : i32
    %c0_i32_0 = arith.constant 0 : i32
    %c0_i32_1 = arith.constant 0 : i32
    return %c0_i32, %c0_i32_0 : i32, i32
  }
  func.func @transform_8(%arg0: i32) -> (i32, i32) {
    %c0_i32 = arith.constant 0 : i32
    %c0_i32_0 = arith.constant 0 : i32
    %c0_i32_1 = arith.constant 0 : i32
    return %c0_i32, %c0_i32_0 : i32, i32
  }
  func.func @transform_9(%arg0: i32) -> (i32, i32) {
    %c0_i32 = arith.constant 0 : i32
    %c0_i32_0 = arith.constant 0 : i32
    %c0_i32_1 = arith.constant 0 : i32
    return %c0_i32, %c0_i32_0 : i32, i32
  }
  func.func @transform_10(%arg0: i32) -> (i32, i32) {
    %c0_i32 = arith.constant 0 : i32
    %c0_i32_0 = arith.constant 0 : i32
    %c0_i32_1 = arith.constant 0 : i32
    return %c0_i32, %c0_i32_0 : i32, i32
  }
  func.func @transform_11(%arg0: i32) -> (i32, i32) {
    %c0_i32 = arith.constant 0 : i32
    %c0_i32_0 = arith.constant 0 : i32
    %c0_i32_1 = arith.constant 0 : i32
    return %c0_i32, %c0_i32_0 : i32, i32
  }
  func.func @transform_12(%arg0: i32) -> (i32, i32) {
    %c0_i32 = arith.constant 0 : i32
    %c0_i32_0 = arith.constant 0 : i32
    %c0_i32_1 = arith.constant 0 : i32
    return %c0_i32, %c0_i32_0 : i32, i32
  }
  func.func @transform_13(%arg0: i32) -> (i32, i32) {
    %c0_i32 = arith.constant 0 : i32
    %c0_i32_0 = arith.constant 0 : i32
    return %arg0, %c0_i32 : i32, i32
  }
}

</mosaic_0001>

<bundles_post_ra>
// kernel: tpu_custom_call.1
= control target key start
LH: loop header
LB: loop body
LE: loop exit
PB: predicated region body
PF: predicated region fallthrough
CT: control target
= control target key end

     0   :  { %s2232_s0 = inlined_call_operand.vmem [shape: f32[16,32], index: 0, kind: input, shape index: {}]   ;;  %s2233_s1 = inlined_call_operand.vmem [shape: bf16[32,96], index: 1, kind: input, shape index: {}]   ;;  %s2234_s2 = inlined_call_operand.vmem [shape: f32[1,96], index: 2, kind: input, shape index: {}]   ;;  %s2235_s3 = inlined_call_operand.vmem [shape: bf16[32,32], index: 3, kind: input, shape index: {}]   ;;  %s2236_s4 = inlined_call_operand.vmem [shape: f32[1,32], index: 4, kind: input, shape index: {}]   ;;  %s2237_s5 = inlined_call_operand.vmem [shape: f32[1,32], index: 5, kind: input, shape index: {}]   ;;  %s2238_s6 = inlined_call_operand.vmem [shape: f32[1,32], index: 6, kind: input, shape index: {}]   ;;  %s2239_s7 = inlined_call_operand.hbm [shape: bf16[32,64], index: 7, kind: input, shape index: {}]   ;;  %s2240_s8 = inlined_call_operand.vmem [shape: f32[1,64], index: 8, kind: input, shape index: {}]   ;;  %s2241_s9 = inlined_call_operand.vmem [shape: bf16[64,32], index: 9, kind: input, shape index: {}]   ;;  %s2242_s10 = inlined_call_operand.vmem [shape: f32[1,32], index: 10, kind: input, shape index: {}]   ;;  %s2243_s11 = inlined_call_operand.vmem [shape: f32[1,32], index: 11, kind: input, shape index: {}]   ;;  %s2244_s12 = inlined_call_operand.vmem [shape: f32[1,32], index: 12, kind: input, shape index: {}]   ;;  %s2245_s13 = inlined_call_operand.hbm [shape: f32[16,32], index: 13, kind: output, shape index: {}]  }
   0x1   :  { %2252 = sst [smem:[#allocation11_spill]] %s2232_s0 }
   0x2   :  { %18 = vsyncpa [#allocation3], 0 }
   0x3   :  { %19 = vsyncpa [#allocation4], 0 }
   0x4   :  { %21 = vsyncpa [#allocation4 + $0x1], 0  ;;  %s1926_s25 = smov 0   ;;  %s1928_s26 = smov 0  }
   0x5   :  { %s1930_s27 = smov 0   ;;  %s1932_s28 = smov 0  }
   0x6 LB: > { %2253 = sst [smem:[#allocation8_spill]] %s1832_s27  ;;  %s1947_s29 = sadd.s32 4294967295, %s1836_s28   ;;  %s1836_s28 = sphi %s1932_s28, %s2266_s28   ;;  %s1832_s27 = sphi %s1930_s27, %s2268_s27   ;;  %s1828_s26 = sphi %s1928_s26, %s2270_s26   ;;  %s1824_s25 = sphi %s1926_s25, %s2269_s25  }
   0x7   : > { %s1470_s30 = sadd.s32 4294967294, %s1836_s28   ;;  %s1951_s14 = sadd.s32 1, %s1836_s28  }
   0x8   : > { %2254 = sst [smem:[#allocation9_spill]] %s1951_s14  ;;  %s312_s15 = sadd.s32 1, %s1832_s27 }
   0x9   : > { %s309_s16 = ssub.s32 %s1836_s28, %s1951_s14  ;;  %p322_p0 = scmp.ne.s32.totalorder %s1832_s27, %s1828_s26 }
   0xa   : > { %p310_p1 = scmp.eq.s32.totalorder %s309_s16, 0  ;;  %p323_p2 = scmp.eq.s32.totalorder %s1947_s29, 1 }
   0xb   : > { %p328_p3 = scmp.ne.s32.totalorder %s1828_s26, %s1824_s25  ;;  %p329_p4 = scmp.eq.s32.totalorder %s1470_s30, 1 }
   0xc   : > { %s1962_s17 = scalar_select %p310_p1, %s1832_s27, %s312_s15  }
   0xd   : > { %p1964_p5 = por %p323_p2, %p322_p0  ;;  %p1968_p6 = por %p329_p4, %p328_p3 }
   0xe   : > { %2255 = sst [smem:[#allocation10_spill]] %s1962_s17  ;;  %p1471_p7 = scmp.ge.s32.totalorder %s1836_s28, 1 }
   0xf   : > { %s2256_s18 = scalar_select %p1964_p5, 1, 0 }
  0x10   : > { %s2257_s19 = scalar_select %p1968_p6, 1, 0 }
  0x11   : > { %p336_p8 = scmp.lt.s32.totalorder %s1836_s28, 3  ;;  %p2249_p9 = scmp.eq.s32.totalorder %s1947_s29, 0 }
  0x12   : > { %s1838_s21 = smov [#allocation2]   ;;  %s1742_s15 = scalar_lea.hbm %s2239_s7, 256 }
  0x13   : > { %p1975_p10 = pnand %p1471_p7, %p336_p8  ;;  %s366_s22 = sshll.u32 %s1838_s21, 4  ;;  %s367_s22 = int_to_ptr.vmem [resolvable:$true] %s366_s22 }
  0x14   : > { %p1743_p13 = scmp.ne.s32.totalorder %s2239_s7, %s1742_s15  ;;  %p1749_p3 = scmp.lt.u32.totalorder %s1742_s15, %s2239_s7 }
  0x15   : > { %s2258_s20 = scalar_select %p1975_p10, 1, 0 }
  0x16   : > { %p1654_p11 = pneg %p1975_p10 }
  0x18   : > { %p1983_p12 = pnand %p2249_p9, %p1654_p11 }
  0x1a   : > { %p1744_p0 = pneg %p1983_p12 }
  0x1c   : > { %p1745_p1 = pnand %p1744_p0, %p1743_p13 }
  0x1e   : > { %p1746_p2 = pneg %p1745_p1 }
  0x20   : > { %p1751_p4 = pnand %p1749_p3, %p1746_p2 }
  0x22   : > { %1754 = shalt.err (!%p1751_p4)
}
  0x23   : > { %s1755_s14 = scalar_lea.vmem %s367_s22, 256  ;;  %p1763_p9 = scmp.lt.s32.totalorder %s367_s22, %s367_s22 }
  0x24   : > { %p1756_p7 = scmp.ne.s32.totalorder %s367_s22, %s1755_s14  ;;  %p1764_p6 = scmp.lt.s32.totalorder %s1755_s14, %s1755_s14 }
  0x26   : > { %p1758_p8 = pnand %p1756_p7, %p1744_p0  ;;  %p1765_p5 = por %p1764_p6, %p1763_p9 }
  0x28   : > { %p1759_p11 = pneg %p1758_p8 }
  0x2a   : > { %p1766_p10 = pnand %p1765_p5, %p1759_p11 }
  0x2c   : > { %1769 = shalt.err (!%p1766_p10)
}
  0x2d   : > { %s1839_s17 = smov 64   ;;  %s1840_s24 = smov 4  }
  0x2e   : > { %1657 = dma.hbm_to_vmem [thread:$0]  (!%p1983_p12), %s2239_s7, 256, %s367_s22, [#allocation3], %s1839_s17, %s1839_s17, %s1840_s24  }
  0x2f   : > { %p2260_p13 = scmp.ne.s32.totalorder %s2258_s20, 0 }
  0x30   : > { %p2261_p1 = scmp.eq.s32.totalorder (!%p2260_p13), %s1947_s29, 0 }
  0x31   : > { %404 = sbr.rel (%p2260_p13) target bundleno = 3278 (0xcce), region = 72 }
  0x38   : > { %1815 = dma.done.wait (%p2261_p1), [#allocation3], 256   ;;  %p2262_p0 = pmov %p2261_p1 }
  0x39   : > { %p447_p5 = scmp.lt.s32.totalorder %s1947_s29, 1  ;;  %v1841_v0 = vmov 0.0   ;;  %vm1842_vm0 = vmmov 0   ;;  %s2263_s0 = sld [smem:[#allocation11_spill]]  ;;  %v1714_v1 = vld [vmem:[%s2233_s1] sm:$0xff]   ;;  %v1715_v2 = vld [vmem:[%s2233_s1 + $0x8] sm:$0xff]   ;;  %v522_v17 = vlaneseq }
  0x3a   : > { %1817 = vsyncadd (%p2262_p0), [#allocation3], 4294967040  ;;  %1548 = vmatprep.subr.bf16.mxu1 %v1841_v0  ;;  %1552 = vmatprep.mubr.msk.bf16.mxu1 %vm1842_vm0, %v1841_v0  ;;  %vm477_vm1 = vcmask 261120   ;;  %v1478_v5 = vld [vmem:[%s2234_s2] ss:$0 sm:$0xff]  ;;  %s1845_s20 = smov 88  }
  0x3b   : > { %s448_s27 = scalar_select %p447_p5, %s1947_s29, 1  ;;  %1562 = vmatprep.subr.bf16.mxu0 %v1841_v0  ;;  %1564 = vmatprep.mubr.msk.bf16.mxu0 %vm1842_vm0, %v1841_v0  ;;  %vm535_vm2 = vcmask 64512   ;;  %v523_v18 = vshrl.u32 %v522_v17, 7  ;;  %v525_v19 = vand.u32 127, %v522_v17  ;;  %v1846_v20 = vmov -1e+30  }
  0x3c   : > { %1549 = vmatpush3.bf16.msra.mxu1 %v1714_v1  ;;  %s1847_s22 = smov 56   ;;  %s1849_s15 = smov 80   ;;  %vm597_vm4 = vcmask 1043456   ;;  %v528_v50 = vld [vmem:[%s2235_s3] sm:$0xf]  ;;  %vm1310_vm5 = vcmask 523264  }
  0x3d   : > { %s1477_s14 = sshll.u32 %s448_s27, 3  ;;  %1550 = vmatprep.subr.bf16.mxu1 %v1841_v0  ;;  %s1843_s27 = smov 120   ;;  %vm526_vm3 = vcmp.le.s32.totalorder %v525_v19, %v523_v18  ;;  %v805_v51 = vsel %vm597_vm4, %v528_v50, 0  ;;  %v529_v52 = vld [vmem:[%s2235_s3 + $0x4] sm:$0xf] }
  0x3e   : > { %v2054_v21 = vsel %vm526_vm3, 0.0, %v1846_v20  ;;  %s1850_s21 = smov 112   ;;  %s1851_s17 = smov 72   ;;  %v759_v53 = vsel %vm597_vm4, %v529_v52, 0 }
  0x3f   : > { %s450_s23 = scalar_lea.vmem %s2263_s0, %s1477_s14  ;;  %s1844_s14 = smov 96  }
  0x40   : > { %v2026_v3 = vld [vmem:[%s450_s23] sm:$0xff]  ;;  %1551 = vmatpush3.bf16.msra.mxu1 %v1715_v2  ;;  %s1848_s23 = smov 64   ;;  %s1510_s16 = sshll.u32 %s1947_s29, 7 }
  0x41   : > { %v453_v4 = vpack.c.bf16 %v2026_v3, %v2026_v3  ;;  %1556 = vmatprep.subr.bf16.mxu1 %v1841_v0  ;;  %s2189_s0 = scalar_lea.hbm %s2245_s13, %s1510_s16  ;;  %p2264_p9 = scmp.ne.s32.totalorder %s2256_s18, 0 }
  0x42   : > { %s1855_s29 = smov [#allocation5]  }
  0x43   : > { %1553 = vmatmul.mubr.msk.bf16.vlgmr.msra.gmra.mrb[0].mxu1 %vm477_vm1, %v453_v4 }
  0x44   : > { %1558 = vmatprep.mubr.msk.bf16.mxu1 %vm1842_vm0, %v1841_v0 }
 0x116   : > { %v515_v6 = vpop.f32.mrb[0].mxu1 }
 0x117   : > { %v516_v7 = vadd.f32 %v1478_v5, %v515_v6  ;;  %v1554_v8 = vpop.f32.mrb[1].mxu1 }
 0x118   : > { %v518_v9 = vpop.f32.mrb[2].mxu1 }
 0x119   : > { %v2038_v10 = vpack.c.bf16 %v516_v7, %v516_v7  ;;  %v1555_v11 = vpop.f32.mrb[3].mxu1 }
 0x11b   : > { %644 = vrot.lane.b32.xlu1 %v2038_v10, %s1843_s27  ;;  %533 = vrot.lane.b32.xlu0 %v2038_v10, %s1844_s14  ;;  %s1852_s14 = smov 48  }
 0x11f   : > { %646 = vrot.lane.b32.xlu0 %v2038_v10, %s1845_s20  ;;  %s1853_s20 = smov 104  }
 0x18d   : > { %v534_v12 = vpop.permute.xlu0 %533  ;;  %v645_v16 = vpop.permute.xlu1 %644 }
 0x18e   : > { %v540_v13 = vsel %vm535_vm2, %v534_v12, 0 }
 0x18f   : > { %1557 = vmatpush3.bf16.xpose.msra.mxu1 %v540_v13 }
 0x190   : > { %1568 = vmatprep.subr.bf16.mxu1 %v1841_v0 }
 0x191   : > { %v647_v14 = vpop.permute.xlu0 %646 }
 0x192   : > { %v652_v15 = vsel %vm535_vm2, %v647_v14, 0 }
 0x196   : > { %1559 = vmatmul.mubr.msk.bf16.vlgmr.msra.gmra.mrb[4].mxu1 %vm535_vm2, %v2038_v10 }
 0x197   : > { %1569 = vmatpush3.bf16.xpose.msra.mxu1 %v652_v15  ;;  %1570 = vmatprep.mubr.msk.bf16.mxu1 %vm1842_vm0, %v1841_v0 }
 0x198   : > { %1580 = vmatprep.subr.bf16.mxu1 %v1841_v0 }
 0x19e   : > { %1571 = vmatmul.mubr.msk.bf16.vlgmr.msra.gmra.mrb[8].mxu1 %vm535_vm2, %v645_v16 }
 0x19f   : > { %1582 = vmatprep.mubr.msk.bf16.mxu1 %vm1842_vm0, %v1841_v0  ;;  %1581 = vmatpush3.bf16.msra.mxu1 %v759_v53 }
 0x1a0   : > { %1592 = vmatprep.subr.bf16.mxu1 %v1841_v0 }
 0x269   : > { %v576_v22 = vpop.f32.mrb[4].mxu1 }
 0x26a   : > { %v577_v23 = vadd.f32 %v576_v22, %v2054_v21  ;;  %v1560_v24 = vpop.f32.mrb[5].mxu1 }
 0x26b   : > { %v579_v25 = vpop.f32.mrb[6].mxu1 }
 0x26c   : > { %v1561_v26 = vpop.f32.mrb[7].mxu1  ;;  %v582_v27 = vsel %vm535_vm2, %v577_v23, -inf }
 0x26d   : > { %583 = vmax.xlane.f32.xlu1 %v582_v27 }
 0x271   : > { %v688_v28 = vpop.f32.mrb[8].mxu1 }
 0x272   : > { %v689_v29 = vadd.f32 %v688_v28, %v2054_v21  ;;  %v1572_v30 = vpop.f32.mrb[9].mxu1 }
 0x273   : > { %v691_v31 = vpop.f32.mrb[10].mxu1 }
 0x274   : > { %v1573_v32 = vpop.f32.mrb[11].mxu1  ;;  %v694_v33 = vsel %vm535_vm2, %v689_v29, -inf }
 0x275   : > { %695 = vmax.xlane.f32.xlu0 %v694_v33 }
 0x27e   : > { %704 = vrot.lane.b32.xlu1 %v2038_v10, %s1847_s22 }
 0x28b   : > { %592 = vrot.lane.b32.xlu0 %v2038_v10, %s1848_s23  ;;  %s444_s23 = sand.u32 1, %s1828_s26  }
 0x28f   : > { %849 = vrot.lane.b32.xlu0 %v2038_v10, %s1849_s15  ;;  %s1854_s15 = smov 40  }
 0x293   : > { %847 = vrot.lane.b32.xlu0 %v2038_v10, %s1850_s21  ;;  %s1386_s21 = scalar_lea.sflag [#allocation4], %s444_s23 }
 0x2fa   : > { %v584_v34 = vpop.xlane.xlu1 %583 }
 0x2fb   : > { %v585_v35 = vsub.f32 %v577_v23, %v584_v34 }
 0x2fd   : > { %v586_v36 = vmul.f32 1.442695, %v585_v35 }
 0x2fe   : > { %v705_v43 = vpop.permute.xlu1 %704 }
 0x2ff   : > { %1722 = vpow2.f32 %v586_v36  ;;  %v710_v46 = vsel %vm597_vm4, %v705_v43, 0 }
 0x302   : > { %v696_v37 = vpop.xlane.xlu0 %695 }
 0x303   : > { %v697_v38 = vsub.f32 %v689_v29, %v696_v37 }
 0x305   : > { %v698_v39 = vmul.f32 1.442695, %v697_v38 }
 0x306   : > { %v593_v40 = vpop.permute.xlu0 %592 }
 0x307   : > { %1724 = vpow2.f32 %v698_v39  ;;  %v599_v41 = vsel %vm597_vm4, %v593_v40, 0  ;;  %v530_v39 = vld [vmem:[%s2235_s3 + $0x8] sm:$0xf] }
 0x308   : > { %1563 = vmatpush3.bf16.msra.mxu0 %v599_v41  ;;  %v962_v40 = vsel %vm597_vm4, %v530_v39, 0  ;;  %v1496_v39 = vld [vmem:[%s2238_s6] ss:$0 sm:$0xff] }
 0x309   : > { %v1723_v42 = vpop.eup %1722  ;;  %1574 = vmatprep.subr.bf16.mxu0 %v1841_v0 }
 0x30a   : > { %v588_v44 = vsel %vm535_vm2, %v1723_v42, 0.0  ;;  %v591_v45 = vpack.c.bf16 %v1723_v42, %v1723_v42  ;;  %v850_v54 = vpop.permute.xlu0 %849 }
 0x30b   : > { %589 = vadd.xlane.f32.xlu0 %v588_v44  ;;  %v855_v11 = vsel %vm535_vm2, %v850_v54, 0 }
 0x30c   : > { %1565 = vmatmul.mubr.msk.bf16.vlgmr.msra.gmra.mrb[0].mxu0 %vm535_vm2, %v591_v45 }
 0x30d   : > { %1575 = vmatpush3.bf16.msra.mxu0 %v710_v46  ;;  %1576 = vmatprep.mubr.msk.bf16.mxu0 %vm1842_vm0, %v1841_v0 }
 0x30e   : > { %1586 = vmatprep.subr.bf16.mxu0 %v1841_v0  ;;  %v848_v55 = vpop.permute.xlu0 %847 }
 0x311   : > { %v1725_v47 = vpop.eup %1724 }
 0x312   : > { %v700_v48 = vsel %vm535_vm2, %v1725_v47, 0.0  ;;  %v703_v49 = vpack.c.bf16 %v1725_v47, %v1725_v47 }
 0x313   : > { %701 = vadd.xlane.f32.xlu1 %v700_v48 }
 0x314   : > { %1577 = vmatmul.mubr.msk.bf16.vlgmr.msra.gmra.mrb[4].mxu0 %vm535_vm2, %v703_v49 }
 0x315   : > { %1588 = vmatprep.mubr.msk.bf16.mxu0 %vm1842_vm0, %v1841_v0  ;;  %1587 = vmatpush3.bf16.msra.mxu0 %v805_v51 }
 0x316   : > { %1598 = vmatprep.subr.bf16.mxu0 %v1841_v0 }
 0x321   : > { %1007 = vrot.lane.b32.xlu0 %v2038_v10, %s1851_s17 }
 0x398   : > { %v590_v56 = vpop.xlane.xlu0 %589 }
 0x399   : > { %1726 = vrcp.f32 %v590_v56 }
 0x39c   : > { %v1008_v34 = vpop.permute.xlu0 %1007 }
 0x39d   : > { %v1013_v37 = vsel %vm535_vm2, %v1008_v34, 0 }
 0x3a0   : > { %v702_v57 = vpop.xlane.xlu1 %701 }
 0x3a1   : > { %1728 = vrcp.f32 %v702_v57 }
 0x3a3   : > { %v1727_v58 = vpop.eup %1726 }
 0x3ab   : > { %v1729_v2 = vpop.eup %1728 }
 0x3df   : > { %v635_v59 = vpop.f32.mrb[0].mxu0 }
 0x3e0   : > { %v642_v60 = vmul.f32 %v1727_v58, %v635_v59  ;;  %v1566_v61 = vpop.f32.mrb[1].mxu0 }
 0x3e1   : > { %v638_v62 = vpop.f32.mrb[2].mxu0 }
 0x3e2   : > { %v643_v63 = vpack.c.bf16 %v642_v60, %v642_v60  ;;  %v1567_v1 = vpop.f32.mrb[3].mxu0 }
 0x3e4   : > { %1589 = vmatmul.mubr.msk.bf16.vlgmr.msra.gmra.mrb[8].mxu0 %vm535_vm2, %v643_v63 }
 0x3e5   : > { %1600 = vmatprep.mubr.msk.bf16.mxu0 %vm1842_vm0, %v1841_v0 }
 0x3e7   : > { %v746_v4 = vpop.f32.mrb[4].mxu0 }
 0x3e8   : > { %v753_v5 = vmul.f32 %v1729_v2, %v746_v4  ;;  %v1578_v6 = vpop.f32.mrb[5].mxu0 }
 0x3e9   : > { %v749_v7 = vpop.f32.mrb[6].mxu0 }
 0x3ea   : > { %v754_v8 = vpack.c.bf16 %v753_v5, %v753_v5  ;;  %v1579_v9 = vpop.f32.mrb[7].mxu0 }
 0x3ec   : > { %1583 = vmatmul.mubr.msk.bf16.vlgmr.msra.gmra.mrb[12].mxu1 %vm535_vm2, %v754_v8 }
 0x3ed   : > { %1593 = vmatpush3.bf16.xpose.msra.mxu1 %v855_v11  ;;  %1594 = vmatprep.mubr.msk.bf16.mxu1 %vm1842_vm0, %v1841_v0 }
 0x3ee   : > { %1604 = vmatprep.subr.bf16.mxu1 %v1841_v0 }
 0x3f4   : > { %1595 = vmatmul.mubr.msk.bf16.vlgmr.msra.gmra.mrb[16].mxu1 %vm535_vm2, %v848_v55 }
 0x3f5   : > { %1606 = vmatprep.mubr.msk.bf16.mxu1 %vm1842_vm0, %v1841_v0  ;;  %1605 = vmatpush3.bf16.msra.mxu1 %v962_v40 }
 0x3f6   : > { %1616 = vmatprep.subr.bf16.mxu1 %v1841_v0 }
 0x4b7   : > { %v841_v12 = vpop.f32.mrb[8].mxu0 }
 0x4b8   : > { %v1590_v13 = vpop.f32.mrb[9].mxu0 }
 0x4b9   : > { %v844_v14 = vpop.f32.mrb[10].mxu0 }
 0x4ba   : > { %v1591_v15 = vpop.f32.mrb[11].mxu0 }
 0x4bf   : > { %v795_v16 = vpop.f32.mrb[12].mxu1 }
 0x4c0   : > { %v2098_v17 = vadd.f32 %v841_v12, %v795_v16  ;;  %v1584_v18 = vpop.f32.mrb[13].mxu1  ;;  %v1494_v16 = vld [vmem:[%s2236_s4] ss:$0 sm:$0xff] }
 0x4c1   : > { %v798_v19 = vpop.f32.mrb[14].mxu1 }
 0x4c2   : > { %v1585_v20 = vpop.f32.mrb[15].mxu1 }
 0x4c7   : > { %v891_v22 = vpop.f32.mrb[16].mxu1 }
 0x4c8   : > { %v892_v23 = vadd.f32 %v891_v22, %v2054_v21  ;;  %v1596_v24 = vpop.f32.mrb[17].mxu1 }
 0x4c9   : > { %v894_v25 = vpop.f32.mrb[18].mxu1 }
 0x4ca   : > { %v1597_v26 = vpop.f32.mrb[19].mxu1  ;;  %v897_v27 = vsel %vm535_vm2, %v892_v23, -inf }
 0x4cb   : > { %898 = vmax.xlane.f32.xlu1 %v897_v27 }
 0x4dc   : > { %907 = vrot.lane.b32.xlu1 %v2038_v10, %s1852_s14 }
 0x4e0   : > { %1005 = vrot.lane.b32.xlu1 %v2038_v10, %s1853_s20 }
 0x558   : > { %v899_v28 = vpop.xlane.xlu1 %898 }
 0x559   : > { %v900_v29 = vsub.f32 %v892_v23, %v899_v28 }
 0x55b   : > { %v901_v30 = vmul.f32 1.442695, %v900_v29 }
 0x55c   : > { %v908_v31 = vpop.permute.xlu1 %907 }
 0x55d   : > { %1730 = vpow2.f32 %v901_v30  ;;  %v913_v32 = vsel %vm597_vm4, %v908_v31, 0  ;;  %v1716_v30 = vld [vmem:[#allocation2] sm:$0xff]   ;;  %v1717_v31 = vld [vmem:[#allocation2 + $0x8] sm:$0xff]  }
 0x55e   : > { %1599 = vmatpush3.bf16.msra.mxu0 %v913_v32  ;;  %v1719_v32 = vld [vmem:[%s2241_s9 + $0x8] sm:$0xff]  }
 0x55f   : > { %1610 = vmatprep.subr.bf16.mxu0 %v1841_v0 }
 0x560   : > { %v1006_v38 = vpop.permute.xlu1 %1005 }
 0x567   : > { %v1731_v33 = vpop.eup %1730 }
 0x568   : > { %v903_v35 = vsel %vm535_vm2, %v1731_v33, 0.0  ;;  %v906_v36 = vpack.c.bf16 %v1731_v33, %v1731_v33 }
 0x569   : > { %904 = vadd.xlane.f32.xlu1 %v903_v35 }
 0x56a   : > { %1601 = vmatmul.mubr.msk.bf16.vlgmr.msra.gmra.mrb[12].mxu0 %vm535_vm2, %v906_v36 }
 0x56b   : > { %1611 = vmatpush3.bf16.xpose.msra.mxu0 %v1013_v37  ;;  %1612 = vmatprep.mubr.msk.bf16.mxu0 %vm1842_vm0, %v1841_v0  ;;  %v1495_v37 = vld [vmem:[%s2237_s5] ss:$0 sm:$0xff] }
 0x56c   : > { %1622 = vmatprep.subr.bf16.mxu0 %v1841_v0 }
 0x572   : > { %1613 = vmatmul.mubr.msk.bf16.vlgmr.msra.gmra.mrb[16].mxu0 %vm535_vm2, %v1006_v38 }
 0x573   : > { %1624 = vmatprep.mubr.msk.bf16.mxu0 %vm1842_vm0, %v1841_v0 }
 0x5f6   : > { %v905_v41 = vpop.xlane.xlu1 %904 }
 0x5f7   : > { %1732 = vrcp.f32 %v905_v41 }
 0x601   : > { %v1733_v42 = vpop.eup %1732 }
 0x63d   : > { %v949_v43 = vpop.f32.mrb[12].mxu0 }
 0x63e   : > { %v956_v44 = vmul.f32 %v1733_v42, %v949_v43  ;;  %v1602_v45 = vpop.f32.mrb[13].mxu0  ;;  %v1720_v43 = vld [vmem:[%s2241_s9 + $0x10] sm:$0xff]  }
 0x63f   : > { %v952_v46 = vpop.f32.mrb[14].mxu0  ;;  %v1497_v45 = vld [vmem:[%s2240_s8] ss:$0 sm:$0xff] }
 0x640   : > { %v957_v47 = vpack.c.bf16 %v956_v44, %v956_v44  ;;  %v1603_v48 = vpop.f32.mrb[15].mxu0  ;;  %v1721_v44 = vld [vmem:[%s2241_s9 + $0x18] sm:$0xff]  }
 0x642   : > { %1607 = vmatmul.mubr.msk.bf16.vlgmr.msra.gmra.mrb[20].mxu1 %vm535_vm2, %v957_v47 }
 0x643   : > { %1618 = vmatprep.mubr.msk.bf16.mxu1 %vm1842_vm0, %v1841_v0 }
 0x645   : > { %v1049_v49 = vpop.f32.mrb[16].mxu0 }
 0x646   : > { %v1050_v50 = vadd.f32 %v1049_v49, %v2054_v21  ;;  %v1614_v51 = vpop.f32.mrb[17].mxu0 }
 0x647   : > { %v1052_v52 = vpop.f32.mrb[18].mxu0 }
 0x648   : > { %v1615_v53 = vpop.f32.mrb[19].mxu0  ;;  %v1055_v54 = vsel %vm535_vm2, %v1050_v50, -inf }
 0x649   : > { %1056 = vmax.xlane.f32.xlu0 %v1055_v54 }
 0x65f   : > { %1065 = vrot.lane.b32.xlu0 %v2038_v10, %s1854_s15  ;;  %v531_v10 = vld [vmem:[%s2235_s3 + $0xc] sm:$0xf]  ;;  %s1476_s15 = sshll.u32 %s444_s23, 3 }
 0x660   : > { %v1120_v62 = vsel %vm597_vm4, %v531_v10, 0  ;;  %s446_s27 = scalar_lea.vmem [#allocation5], %s1476_s15  ;;  %s1774_s15 = sshll.u32 %s1855_s29, 4  ;;  %s1775_s15 = int_to_ptr.vmem [resolvable:$false] %s1774_s15 }
 0x661   : > { %1623 = vmatpush3.bf16.msra.mxu0 %v1120_v62  ;;  %s1399_s14 = sshll.u32 %s446_s27, 4  ;;  %s1776_s24 = scalar_lea.vmem %s1775_s15, 256  ;;  %s2191_s14 = int_to_ptr.vmem [resolvable:$true] %s1399_s14 }
 0x662   : > { %1636 = vmatprep.subr.bf16.mxu0 %v1841_v0  ;;  %s1770_s17 = scalar_lea.vmem %s2191_s14, 128  ;;  %p1777_p2 = scmp.lt.s32.totalorder %s2191_s14, %s1775_s15 }
 0x663   : > { %p1771_p6 = scmp.ne.s32.totalorder %s2191_s14, %s1770_s17  ;;  %p1778_p3 = scmp.lt.s32.totalorder %s1776_s24, %s1770_s17 }
 0x665   : > { %p1772_p10 = pnand %p1771_p6, %p2264_p9  ;;  %p1779_p4 = por %p1778_p3, %p1777_p2 }
 0x667   : > { %p1773_p12 = pneg %p1772_p10 }
 0x669   : > { %p1780_p7 = pnand %p1779_p4, %p1773_p12 }
 0x6d6   : > { %v1057_v55 = vpop.xlane.xlu0 %1056 }
 0x6d7   : > { %v1058_v56 = vsub.f32 %v1050_v50, %v1057_v55 }
 0x6d9   : > { %v1059_v57 = vmul.f32 1.442695, %v1058_v56 }
 0x6da   : > { %v1066_v58 = vpop.permute.xlu0 %1065 }
 0x6db   : > { %1734 = vpow2.f32 %v1059_v57  ;;  %v1071_v59 = vsel %vm597_vm4, %v1066_v58, 0 }
 0x6dc   : > { %1617 = vmatpush3.bf16.msra.mxu1 %v1071_v59 }
 0x6dd   : > { %1628 = vmatprep.subr.bf16.mxu1 %v1841_v0 }
 0x6e5   : > { %v1735_v21 = vpop.eup %1734 }
 0x6e6   : > { %v1061_v60 = vsel %vm535_vm2, %v1735_v21, 0.0  ;;  %v1064_v61 = vpack.c.bf16 %v1735_v21, %v1735_v21 }
 0x6e7   : > { %1062 = vadd.xlane.f32.xlu1 %v1061_v60 }
 0x6e8   : > { %1619 = vmatmul.mubr.msk.bf16.vlgmr.msra.gmra.mrb[24].mxu1 %vm535_vm2, %v1064_v61 }
 0x6e9   : > { %1632 = vmatprep.mubr.msk.bf16.mxu1 %vm1842_vm0, %v1841_v0  ;;  %1629 = vmatpush3.bf16.msra.mxu1 %v1716_v30 }
 0x6ea   : > { %1630 = vmatprep.subr.bf16.mxu1 %v1841_v0 }
 0x6ed   : > { %1631 = vmatpush3.bf16.msra.mxu1 %v1717_v31 }
 0x715   : > { %v998_v63 = vpop.f32.mrb[20].mxu1 }
 0x716   : > { %v1004_v1 = vadd.f32 %v998_v63, %v2098_v17  ;;  %v1608_v2 = vpop.f32.mrb[21].mxu1 }
 0x717   : > { %v1001_v4 = vpop.f32.mrb[22].mxu1 }
 0x718   : > { %v1609_v5 = vpop.f32.mrb[23].mxu1 }
 0x719   : > { %v1507_v5 = vld [vmem:[%s2243_s11] ss:$0 sm:$0xff] }
 0x774   : > { %v1063_v6 = vpop.xlane.xlu1 %1062 }
 0x775   : > { %1736 = vrcp.f32 %v1063_v6 }
 0x77f   : > { %v1737_v7 = vpop.eup %1736 }
 0x7bb   : > { %v1107_v8 = vpop.f32.mrb[24].mxu1 }
 0x7bc   : > { %v1114_v9 = vmul.f32 %v1737_v7, %v1107_v8  ;;  %v1620_v11 = vpop.f32.mrb[25].mxu1  ;;  %v1508_v7 = vld [vmem:[%s2244_s12] ss:$0 sm:$0xff] }
 0x7bd   : > { %v1110_v12 = vpop.f32.mrb[26].mxu1 }
 0x7be   : > { %v1115_v13 = vpack.c.bf16 %v1114_v9, %v1114_v9  ;;  %v1621_v14 = vpop.f32.mrb[27].mxu1 }
 0x7c0   : > { %1625 = vmatmul.mubr.msk.bf16.vlgmr.msra.gmra.mrb[20].mxu0 %vm535_vm2, %v1115_v13 }
 0x7c1   : > { %1644 = vmatprep.mubr.msk.bf16.mxu0 %vm1842_vm0, %v1841_v0 }
 0x893   : > { %v1156_v15 = vpop.f32.mrb[20].mxu0 }
 0x894   : > { %v1162_v17 = vadd.f32 %v1156_v15, %v1004_v1  ;;  %v1626_v18 = vpop.f32.mrb[21].mxu0 }
 0x895   : > { %v1159_v19 = vpop.f32.mrb[22].mxu0 }
 0x896   : > { %v1170_v20 = vadd.f32 %v1494_v16, %v1162_v17  ;;  %v1627_v22 = vpop.f32.mrb[23].mxu0 }
 0x898   : > { %v1171_v23 = vadd.f32 %v1170_v20, %v2026_v3  ;;  %v1718_v3 = vld [vmem:[%s2241_s9] sm:$0xff]  }
 0x899   : > { %1637 = vmatpush3.bf16.msra.mxu0 %v1718_v3 }
 0x89a   : > { %v1174_v24 = vsel %vm477_vm1, %v1171_v23, 0.0  ;;  %1638 = vmatprep.subr.bf16.mxu0 %v1841_v0 }
 0x89b   : > { %1175 = vadd.xlane.f32.xlu1 %v1174_v24 }
 0x89d   : > { %1639 = vmatpush3.bf16.msra.mxu0 %v1719_v32 }
 0x89e   : > { %1640 = vmatprep.subr.bf16.mxu0 %v1841_v0 }
 0x8a1   : > { %1641 = vmatpush3.bf16.msra.mxu0 %v1720_v43 }
 0x8a2   : > { %1642 = vmatprep.subr.bf16.mxu0 %v1841_v0  ;;  %v1501_v0 = vld [vmem:[%s2242_s10] ss:$0 sm:$0xff] }
 0x8a5   : > { %1643 = vmatpush3.bf16.msra.mxu0 %v1721_v44 }
 0x928   : > { %v1176_v25 = vpop.xlane.xlu1 %1175 }
 0x929   : > { %v1178_v26 = vmul.f32 0.03125, %v1176_v25 }
 0x92b   : > { %v1179_v27 = vsub.f32 %v1171_v23, %v1178_v26 }
 0x92d   : > { %v1180_v28 = vmul.f32 %v1179_v27, %v1179_v27 }
 0x92f   : > { %v1181_v29 = vsel %vm477_vm1, %v1180_v28, 0.0 }
 0x930   : > { %1182 = vadd.xlane.f32.xlu1 %v1181_v29 }
 0x9bd   : > { %v1183_v33 = vpop.xlane.xlu1 %1182 }
 0x9be   : > { %v1184_v34 = vmul.f32 0.03125, %v1183_v33 }
 0x9c0   : > { %v1185_v35 = vadd.f32 1e-05, %v1184_v34 }
 0x9c2   : > { %1738 = vrsqrt.f32 %v1185_v35 }
 0x9cc   : > { %v1739_v36 = vpop.eup %1738 }
 0x9cd   : > { %v1187_v38 = vmul.f32 %v1739_v36, %v1179_v27 }
 0x9cf   : > { %v1194_v40 = vmul.f32 %v1495_v37, %v1187_v38 }
 0x9d1   : > { %v1201_v41 = vadd.f32 %v1496_v39, %v1194_v40 }
 0x9d3   : > { %v1202_v42 = vpack.c.bf16 %v1201_v41, %v1201_v41 }
 0x9d5   : > { %1633 = vmatmul.mubr.msk.bf16.vlgmr.msra.gmra.mrb[28].mxu1 %vm477_vm1, %v1202_v42 }
 0xaa8   : > { %v1263_v46 = vpop.f32.mrb[28].mxu1 }
 0xaa9   : > { %v1264_v47 = vadd.f32 %v1497_v45, %v1263_v46  ;;  %v1634_v48 = vpop.f32.mrb[29].mxu1 }
 0xaaa   : > { %v1266_v49 = vpop.f32.mrb[30].mxu1 }
 0xaab   : > { %v1269_v50 = vmax.f32 %v1264_v47, 0.0  ;;  %v1635_v51 = vpop.f32.mrb[31].mxu1 }
 0xaad   : > { %v1270_v52 = vpack.c.bf16 %v1269_v50, %v1269_v50 }
 0xaaf   : > { %1645 = vmatmul.mubr.msk.bf16.vlgmr.msra.gmra.mrb[24].mxu0 %vm1310_vm5, %v1270_v52 }
 0xb82   : > { %v1348_v53 = vpop.f32.mrb[24].mxu0 }
 0xb83   : > { %v1349_v54 = vadd.f32 %v1501_v0, %v1348_v53  ;;  %v1646_v55 = vpop.f32.mrb[25].mxu0 }
 0xb84   : > { %v1351_v56 = vpop.f32.mrb[26].mxu0 }
 0xb85   : > { %v1647_v57 = vpop.f32.mrb[27].mxu0  ;;  %v1354_v58 = vadd.f32 %v1349_v54, %v1201_v41 }
 0xb87   : > { %v1357_v59 = vsel %vm477_vm1, %v1354_v58, 0.0 }
 0xb88   : > { %1358 = vadd.xlane.f32.xlu1 %v1357_v59 }
 0xc15   : > { %v1359_v21 = vpop.xlane.xlu1 %1358 }
 0xc16   : > { %v1360_v60 = vmul.f32 0.03125, %v1359_v21 }
 0xc18   : > { %v1361_v61 = vsub.f32 %v1354_v58, %v1360_v60 }
 0xc1a   : > { %v1362_v10 = vmul.f32 %v1361_v61, %v1361_v61 }
 0xc1c   : > { %v1363_v62 = vsel %vm477_vm1, %v1362_v10, 0.0 }
 0xc1d   : > { %1364 = vadd.xlane.f32.xlu1 %v1363_v62 }
 0xcaa   : > { %v1365_v63 = vpop.xlane.xlu1 %1364 }
 0xcab   : > { %v1366_v1 = vmul.f32 0.03125, %v1365_v63 }
 0xcad   : > { %v1367_v2 = vadd.f32 1e-05, %v1366_v1 }
 0xcaf   : > { %1740 = vrsqrt.f32 %v1367_v2 }
 0xcb9   : > { %v1741_v4 = vpop.eup %1740 }
 0xcba   : > { %v1369_v6 = vmul.f32 %v1741_v4, %v1361_v61 }
 0xcbc   : > { %v1376_v8 = vmul.f32 %v1507_v5, %v1369_v6 }
 0xcbe   : > { %v1383_v9 = vadd.f32 %v1508_v7, %v1376_v8 }
 0xcc0   : > { %1384 = vst.msk [vmem:[%s446_s27] sm:$0xff] %vm477_vm1, %v1383_v9 }
 0xcc1   : > { %1783 = shalt.err (!%p1780_p7)
}
 0xcc2   : > { %s1784_s23 = scalar_lea.hbm %s2189_s0, 128  ;;  %s1788_s27 = scalar_lea.hbm %s2245_s13, 256 }
 0xcc3   : > { %p1785_p8 = scmp.ne.s32.totalorder %s2189_s0, %s1784_s23  ;;  %p1789_p1 = scmp.lt.u32.totalorder %s2189_s0, %s2245_s13 }
 0xcc4   : > { %p1790_p0 = scmp.lt.u32.totalorder %s1788_s27, %s1784_s23  ;;  %p1792_p6 = scmp.lt.u32.totalorder %s1784_s23, %s2189_s0 }
 0xcc5   : > { %p1786_p11 = pnand %p1785_p8, %p2264_p9 }
 0xcc6   : > { %p1791_p5 = por %p1790_p0, %p1789_p1 }
 0xcc7   : > { %p1787_p13 = pneg %p1786_p11 }
 0xcc8   : > { %p1793_p10 = por %p1792_p6, %p1791_p5 }
 0xcca   : > { %p1794_p12 = pnand %p1793_p10, %p1787_p13 }
 0xccc   : > { %1797 = shalt.err (!%p1794_p12)
}
 0xccd   : > { %1652 = dma.vmem_to_hbm [thread:$0]  (%p2264_p9), %s2191_s14, 128, %s2189_s0, %s1386_s21  }
 0xcce PF: > { %p1664_p2 = scmp.ge.s32.totalorder %s1836_s28, 2  ;;  %s1411_s17 = sand.u32 1, %s1824_s25  }
 0xccf   : > { %p2265_p3 = scmp.ne.s32.totalorder %s2257_s19, 0  ;;  %s1412_s29 = scalar_lea.sflag [#allocation4], %s1411_s17 }
 0xcd1   : > { %p1659_p4 = pnand %p1664_p2, %p2265_p3 }
 0xcd3   : > { %1819 = dma.done.wait (!%p1659_p4), %s1412_s29, 128  }
 0xcd4   : > { %1821 = vsyncadd (!%p1659_p4), %s1412_s29, 4294967168  ;;  %s2266_s28 = sld [smem:[#allocation9_spill]]  ;;  %s2267_s15 = sld [smem:[#allocation8_spill]] }
 0xcd5   : > { %s2268_s27 = sld [smem:[#allocation10_spill]]  ;;  %s2269_s25 = smov %s1828_s26 }
 0xcda   : > { %p24_p7 = scmp.ge.s32.totalorder %s2266_s28, 4   ;;  %s2270_s26 = smov %s2267_s15 }
 0xcdc   :  { %26 = sbr.rel (!%p24_p7) target bundleno = 6 (0x6), region = 112 }
 0xce3   :  { %1417 = vsyncpa [#allocation3], 1 }
 0xce4   :  { %1419 = vsyncpa [#allocation3 + $0x1], 1 }
 0xce5   :  { %1420 = vsyncpa [#allocation4], 1 }
 0xce6   :  { %1422 = vsyncpa [#allocation4 + $0x1], 1 }

</bundles_post_ra>
